<compile_context>
chip_gen: v6e
topology: v6e:2x2x1
jax: 0.10.0
libtpu: 0.0.40
codegen_flags: <defaults>
</compile_context>

<pallas_src>
import functools
import math

import jax
import jax.numpy as jnp
from jax.experimental import pallas as pl
from jax.experimental.pallas import tpu as pltpu


_VMEM_SOFT_DEFAULT = 32 * 1024 * 1024   # Mosaic scoped-VMEM default
_VMEM_CAP = 64 * 1024 * 1024            # physical VMEM per core on v7x (smallest gen)
_SCORE_VMEM_BUDGET = 16 * 1024 * 1024   # budget for f32 (S,S) score temps per step


def _pick_row_block(m, target):
    """Largest multiple of 8 <= target that divides m; else the full dim."""
    if m <= target:
        return m
    t = (target // 8) * 8
    while t >= 8:
        if m % t == 0:
            return t
        t -= 8
    return m


def _compiler_params(semantics, est_vmem_bytes):
    """dimension_semantics + a raised VMEM limit when resident weights need it."""
    limit = None
    if est_vmem_bytes > _VMEM_SOFT_DEFAULT:
        # cap at v7x's 64 MiB physical; if a config truly needs more, shrink tm or
        # keep weights in bf16 (see perf-review v7x note).
        limit = min(int(est_vmem_bytes * 1.25), _VMEM_CAP)
    return pltpu.CompilerParams(dimension_semantics=semantics,
                                vmem_limit_bytes=limit)


def _itemsize(x):
    return jnp.dtype(x.dtype).itemsize


# ----------------------------- LayerNorm epilogue -----------------------------

def _ln_epilogue(y_f32, g_ref, b_ref, o_ref, eps):
    u = jnp.mean(y_f32, axis=-1, keepdims=True)
    xc = y_f32 - u
    s = jnp.mean(xc * xc, axis=-1, keepdims=True)
    yn = xc * jax.lax.rsqrt(s + eps)
    o_ref[...] = (g_ref[...].astype(jnp.float32) * yn
                  + b_ref[...].astype(jnp.float32)).astype(o_ref.dtype)


def _ln_kernel(x_ref, g_ref, b_ref, o_ref, *, eps):
    _ln_epilogue(x_ref[...].astype(jnp.float32), g_ref, b_ref, o_ref, eps)


def layernorm(x, gamma, beta, eps=1e-12, *, tm=512):
    """Standalone LayerNorm (embedding output only); stats in f32, gridded over rows."""
    M, H = x.shape
    tm = _pick_row_block(M, tm)
    row = pl.BlockSpec((tm, H), lambda i: (i, 0))
    par = pl.BlockSpec((1, H), lambda i: (0, 0))
    est = (2 * 2 * tm * H + 4 * H) * _itemsize(x)
    return pl.pallas_call(
        functools.partial(_ln_kernel, eps=eps),
        out_shape=jax.ShapeDtypeStruct((M, H), x.dtype),
        grid=(M // tm,),
        in_specs=[row, par, par],
        out_specs=row,
        compiler_params=_compiler_params(("parallel",), est),
    )(x, gamma.reshape(1, H), beta.reshape(1, H))


# --------------------------- fused QKV projection ------------------------------

def _qkv_kernel(x_ref, w_ref, b_ref, o_ref):
    x = x_ref[...]                               # (tm, K): read ONCE per grid step
    for c in range(3):                           # static unroll over Q/K/V
        y = jnp.dot(x, w_ref[c], preferred_element_type=jnp.float32)
        o_ref[c] = (y + b_ref[c].astype(jnp.float32)).astype(o_ref.dtype)


def qkv_projection(x, w, b, *, tm=256):
    """x:(M,K), w:(3,K,H), b:(3,H) -> (3,M,H).  Weight stack resident in VMEM."""
    M, K = x.shape
    H = w.shape[-1]
    tm = _pick_row_block(M, tm)
    isz = _itemsize(x)
    est = 2 * (tm * K + 3 * K * H + 3 * tm * H) * isz
    return pl.pallas_call(
        _qkv_kernel,
        out_shape=jax.ShapeDtypeStruct((3, M, H), x.dtype),
        grid=(M // tm,),
        in_specs=[pl.BlockSpec((tm, K), lambda i: (i, 0)),
                  pl.BlockSpec((3, K, H), lambda i: (0, 0, 0)),   # resident weights
                  pl.BlockSpec((3, 1, H), lambda i: (0, 0, 0))],
        out_specs=pl.BlockSpec((3, tm, H), lambda i: (0, i, 0)),
        compiler_params=_compiler_params(("parallel",), est),
    )(x, w, b.reshape(3, 1, H))


# ------------------ matmul + residual-add + LayerNorm (fused) ------------------

def _matmul_res_ln_kernel(x_ref, w_ref, b_ref, r_ref, g_ref, bb_ref, o_ref, *, eps):
    y = jnp.dot(x_ref[...], w_ref[...], preferred_element_type=jnp.float32)
    y = y + b_ref[...].astype(jnp.float32) + r_ref[...].astype(jnp.float32)
    _ln_epilogue(y, g_ref, bb_ref, o_ref, eps)


def linear_residual_ln(x, w, b, residual, gamma, beta, eps=1e-12, *, tm=256):
    """LayerNorm(x @ w + b + residual).  Weight resident; LN fused in the epilogue."""
    M, K = x.shape
    N = w.shape[-1]
    tm = _pick_row_block(M, tm)
    isz = _itemsize(x)
    est = 2 * (tm * K + K * N + 2 * tm * N) * isz
    row_in = pl.BlockSpec((tm, K), lambda i: (i, 0))
    row_out = pl.BlockSpec((tm, N), lambda i: (i, 0))
    par = pl.BlockSpec((1, N), lambda i: (0, 0))
    return pl.pallas_call(
        functools.partial(_matmul_res_ln_kernel, eps=eps),
        out_shape=jax.ShapeDtypeStruct((M, N), x.dtype),
        grid=(M // tm,),
        in_specs=[row_in,
                  pl.BlockSpec((K, N), lambda i: (0, 0)),          # resident weight
                  par, row_out, par, par],
        out_specs=row_out,
        compiler_params=_compiler_params(("parallel",), est),
    )(x, w, b.reshape(1, N), residual, gamma.reshape(1, N), beta.reshape(1, N))


# --------------------- fused FFN (+ residual + LayerNorm) ----------------------

def _ffn_kernel(x_ref, iw_ref, ib_ref, ow_ref, ob_ref, g_ref, bb_ref, o_ref,
                inter_ref, *, eps):
    x = x_ref[...]
    h = jnp.dot(x, iw_ref[...], preferred_element_type=jnp.float32)
    h = jax.nn.gelu(h + ib_ref[...].astype(jnp.float32), approximate=True)
    inter_ref[...] = h.astype(inter_ref.dtype)          # (tm, I) stays in VMEM only
    y = jnp.dot(inter_ref[...], ow_ref[...], preferred_element_type=jnp.float32)
    y = y + ob_ref[...].astype(jnp.float32) + x.astype(jnp.float32)
    _ln_epilogue(y, g_ref, bb_ref, o_ref, eps)


def ffn_residual_ln(x, i_w, i_b, o_w, o_b, gamma, beta, eps=1e-12, *, tm=256):
    """LayerNorm(gelu(x @ i_w + i_b) @ o_w + o_b + x).  Both weights resident; the
    (tm, inter) gelu intermediate never touches HBM."""
    M, H = x.shape
    I = i_w.shape[-1]
    tm = _pick_row_block(M, tm)
    isz = _itemsize(x)
    est = (2 * (2 * tm * H + 2 * H * I) + tm * I) * isz
    row = pl.BlockSpec((tm, H), lambda i: (i, 0))
    parH = pl.BlockSpec((1, H), lambda i: (0, 0))
    return pl.pallas_call(
        functools.partial(_ffn_kernel, eps=eps),
        out_shape=jax.ShapeDtypeStruct((M, H), x.dtype),
        grid=(M // tm,),
        in_specs=[row,
                  pl.BlockSpec((H, I), lambda i: (0, 0)),          # resident i_w
                  pl.BlockSpec((1, I), lambda i: (0, 0)),
                  pl.BlockSpec((I, H), lambda i: (0, 0)),          # resident o_w
                  parH, parH, parH],
        out_specs=row,
        scratch_shapes=[pltpu.VMEM((tm, I), x.dtype)],
        compiler_params=_compiler_params(("parallel",), est),
    )(x, i_w, i_b.reshape(1, I), o_w, o_b.reshape(1, H),
      gamma.reshape(1, H), beta.reshape(1, H))


# -------------------------------- attention ------------------------------------

def _attn_kernel(q_ref, k_ref, v_ref, m_ref, o_ref, *, heads_per_block, head_dim,
                 scale):
    # q/k/v/o: (S, heads_per_block*head_dim); m: (1, S) additive mask
    mask = m_ref[...].astype(jnp.float32)
    for h in range(heads_per_block):             # static unroll over heads in group
        sl = slice(h * head_dim, (h + 1) * head_dim)
        q = q_ref[:, sl] * scale                 # fold 1/sqrt(Dh) into q
        k = k_ref[:, sl]
        v = v_ref[:, sl]
        s = jax.lax.dot_general(q, k, (((1,), (1,)), ((), ())),
                                preferred_element_type=jnp.float32)
        s = s + mask
        s = s - jnp.max(s, axis=-1, keepdims=True)
        p = jnp.exp(s)
        l = jnp.sum(p, axis=-1, keepdims=True)
        ctx = jnp.dot(p.astype(v.dtype), v, preferred_element_type=jnp.float32)
        o_ref[:, sl] = (ctx * pl.reciprocal(l, approx=True)).astype(o_ref.dtype)


def attention(qkv, add_mask, num_heads):
    """qkv: (3, B*S, H) fused projection output; add_mask: (B, 1, S) additive mask.

    One grid step handles one (batch, head-group).  The head group is the LARGEST
    divisor of num_heads whose lane width hpb*Dh is a multiple of 128 (or the full H)
    and whose f32 score temporaries fit the VMEM budget.  The grid is flattened to a
    single parallel axis so both v7x TensorCores get work even at small B.
    """
    _, M, H = qkv.shape
    B = add_mask.shape[0]
    S = M // B
    Dh = H // num_heads
    scale = 1.0 / math.sqrt(Dh)

    legal = [c for c in range(1, num_heads + 1)
             if num_heads % c == 0 and ((c * Dh) % 128 == 0 or c == num_heads)]
    fitting = [c for c in legal if c * S * S * 4 <= _SCORE_VMEM_BUDGET]
    hpb = max(fitting) if fitting else min(legal)
    W = hpb * Dh
    HB = num_heads // hpb

    q_spec = pl.BlockSpec((None, S, W), lambda g: (0, g // HB, g % HB))
    k_spec = pl.BlockSpec((None, S, W), lambda g: (1, g // HB, g % HB))
    v_spec = pl.BlockSpec((None, S, W), lambda g: (2, g // HB, g % HB))
    m_spec = pl.BlockSpec((None, 1, S), lambda g: (g // HB, 0, 0))
    o_spec = pl.BlockSpec((S, W), lambda g: (g // HB, g % HB))

    est = 2 * 4 * S * W * _itemsize(qkv) + hpb * S * S * 4 + 4 * S
    return pl.pallas_call(
        functools.partial(_attn_kernel, heads_per_block=hpb, head_dim=Dh, scale=scale),
        out_shape=jax.ShapeDtypeStruct((M, H), qkv.dtype),
        grid=(B * HB,),
        in_specs=[q_spec, k_spec, v_spec, m_spec],
        out_specs=o_spec,
        compiler_params=_compiler_params(("parallel",), est),
    )(qkv, qkv, qkv, add_mask)


# ------------------------------ model (glue) -----------------------------------

def init_params(key, *, vocab, type_vocab, max_pos, hidden, inter, layers,
                num_labels, std=0.02):
    ks = iter(jax.random.split(key, 8 + layers * 8))
    nrm = lambda shape: (std * jax.random.normal(next(ks), shape)).astype(jnp.float32)
    p = {
        "word_emb": nrm((vocab, hidden)),
        "pos_emb": nrm((max_pos, hidden)),
        "type_emb": nrm((type_vocab, hidden)),
        "emb_ln_g": jnp.ones((hidden,), jnp.float32),
        "emb_ln_b": jnp.zeros((hidden,), jnp.float32),
        "pool_w": nrm((hidden, hidden)),
        "pool_b": jnp.zeros((hidden,), jnp.float32),
        "cls_w": nrm((hidden, num_labels)),
        "cls_b": jnp.zeros((num_labels,), jnp.float32),
        "layers": [],
    }
    for _ in range(layers):
        lp = {
            "qkv_w": nrm((3, hidden, hidden)),        # fused QKV: (3, H, H)
            "qkv_b": jnp.zeros((3, hidden), jnp.float32),
            "ao_w": nrm((hidden, hidden)), "ao_b": jnp.zeros((hidden,), jnp.float32),
            "ln1_g": jnp.ones((hidden,), jnp.float32),
            "ln1_b": jnp.zeros((hidden,), jnp.float32),
            "i_w": nrm((hidden, inter)), "i_b": jnp.zeros((inter,), jnp.float32),
            "o_w": nrm((inter, hidden)), "o_b": jnp.zeros((hidden,), jnp.float32),
            "ln2_g": jnp.ones((hidden,), jnp.float32),
            "ln2_b": jnp.zeros((hidden,), jnp.float32),
        }
        p["layers"].append(lp)
    return p


def cast_params(params, dtype):
    return jax.tree_util.tree_map(lambda a: a.astype(dtype), params)


def bert_classifier_forward(params, input_ids, attention_mask, token_type_ids,
                            *, num_heads):
    B, S = input_ids.shape
    H = params["word_emb"].shape[1]

    # --- embeddings (gathers stay in XLA) ---
    positions = jnp.arange(S)
    emb = (params["word_emb"][input_ids]
           + params["pos_emb"][positions][None, :, :]
           + params["type_emb"][token_type_ids])
    x = layernorm(emb.reshape(B * S, H), params["emb_ln_g"], params["emb_ln_b"])

    # --- extended additive attention mask (1 keep / 0 pad -> 0 / -1e4), kept f32 ---
    add_mask = ((1.0 - attention_mask.astype(jnp.float32)) * -10000.0).reshape(B, 1, S)

    # --- transformer layers ---
    for lp in params["layers"]:
        qkv = qkv_projection(x, lp["qkv_w"], lp["qkv_b"])             # (3, B*S, H)
        ctx = attention(qkv, add_mask, num_heads)                     # (B*S, H)
        x = linear_residual_ln(ctx, lp["ao_w"], lp["ao_b"], x,
                               lp["ln1_g"], lp["ln1_b"])              # matmul+add+LN
        x = ffn_residual_ln(x, lp["i_w"], lp["i_b"], lp["o_w"], lp["o_b"],
                            lp["ln2_g"], lp["ln2_b"])                 # fused FFN

    # --- pooler (first token) + classifier head: tiny -> plain XLA ---
    cls_tok = x.reshape(B, S, H)[:, 0, :]                             # (B, H)
    pooled = jnp.tanh(cls_tok @ params["pool_w"] + params["pool_b"])
    logits = pooled @ params["cls_w"] + params["cls_b"]               # (B, num_labels)
    return logits


# -------------------------- pure-JAX reference check ---------------------------

def _ref_forward(params, input_ids, attention_mask, token_type_ids, *, num_heads):
    B, S = input_ids.shape
    H = params["word_emb"].shape[1]
    Dh = H // num_heads

    def ln(x, g, b, eps=1e-12):
        u = jnp.mean(x, -1, keepdims=True)
        s = jnp.mean((x - u) ** 2, -1, keepdims=True)
        return g * (x - u) / jnp.sqrt(s + eps) + b

    emb = (params["word_emb"][input_ids]
           + params["pos_emb"][jnp.arange(S)][None]
           + params["type_emb"][token_type_ids])
    x = ln(emb, params["emb_ln_g"], params["emb_ln_b"])
    add_mask = ((1.0 - attention_mask.astype(jnp.float32)) * -10000.0)[:, None, None, :]
    for lp in params["layers"]:
        def proj(i):
            return (x @ lp["qkv_w"][i] + lp["qkv_b"][i]).reshape(
                B, S, num_heads, Dh).transpose(0, 2, 1, 3)
        q, k, v = proj(0), proj(1), proj(2)
        s = jnp.einsum("bhqd,bhkd->bhqk", q, k) / math.sqrt(Dh) + add_mask
        p = jax.nn.softmax(s, axis=-1)
        ctx = jnp.einsum("bhqk,bhkd->bhqd", p, v).transpose(0, 2, 1, 3).reshape(B, S, H)
        x = ln(ctx @ lp["ao_w"] + lp["ao_b"] + x, lp["ln1_g"], lp["ln1_b"])
        inter = jax.nn.gelu(x @ lp["i_w"] + lp["i_b"], approximate=True)
        x = ln(inter @ lp["o_w"] + lp["o_b"] + x, lp["ln2_g"], lp["ln2_b"])
    pooled = jnp.tanh(x[:, 0, :] @ params["pool_w"] + params["pool_b"])
    return pooled @ params["cls_w"] + params["cls_b"]


# ----------------------------------- main ---------------------------------------

if __name__ == "__main__":
    def run_case(name, *, S, hidden, heads, layers, inter, vocab, type_vocab,
                 max_pos, num_labels, tol_f32, check_bf16):
        B = 2
        key = jax.random.PRNGKey(0)
        pkey, ikey = jax.random.split(key)
        params = init_params(pkey, vocab=vocab, type_vocab=type_vocab, max_pos=max_pos,
                             hidden=hidden, inter=inter, layers=layers,
                             num_labels=num_labels)
        input_ids = jax.random.randint(ikey, (B, S), 0, vocab, dtype=jnp.int32)
        pad = S // 4   # batch 0 pads the tail of its sequence; batch 1 is full
        attention_mask = jnp.stack(
            [jnp.concatenate([jnp.ones((S - pad,), jnp.int32),
                              jnp.zeros((pad,), jnp.int32)]),
             jnp.ones((S,), jnp.int32)], axis=0)
        token_type_ids = jnp.concatenate(
            [jnp.zeros((B, S // 2), jnp.int32),
             jnp.ones((B, S - S // 2), jnp.int32)], axis=1)

        ref = _ref_forward(params, input_ids, attention_mask, token_type_ids,
                           num_heads=heads)

        logits = bert_classifier_forward(params, input_ids, attention_mask,
                                         token_type_ids, num_heads=heads)
        logits = jax.block_until_ready(logits)
        assert logits.shape == (B, num_labels)
        assert jnp.allclose(logits, ref, atol=tol_f32, rtol=tol_f32), (name, logits, ref)

        if check_bf16:
            params_bf16 = cast_params(params, jnp.bfloat16)
            lb = bert_classifier_forward(params_bf16, input_ids, attention_mask,
                                         token_type_ids, num_heads=heads)
            lb = jax.block_until_ready(lb)
            assert lb.shape == (B, num_labels)
            assert jnp.allclose(lb.astype(jnp.float32), ref, atol=3e-2, rtol=3e-2), (
                name, lb, ref)

    # toy shapes: strict f32 check against the pure-JAX reference + bf16 check
    run_case("small", S=8, hidden=32, heads=4, layers=2, inter=64,
             vocab=100, type_vocab=2, max_pos=16, num_labels=3,
             tol_f32=1e-3, check_bf16=True)

    # moderate shapes: exercises multi-row-block tiling, lane-dense (128-multiple)
    # attention column slicing, resident-weight reuse and the fused-FFN VMEM scratch.
    run_case("medium", S=256, hidden=256, heads=4, layers=2, inter=1024,
             vocab=1000, type_vocab=2, max_pos=512, num_labels=3,
             tol_f32=2e-2, check_bf16=False)

    print("KERNEL_OK")
</pallas_src>

<mosaic_0001>
module attributes {stable_mosaic.version = 11 : i64} {
  func.func @_ln_kernel(%arg0: i32, %arg1: memref<16x32xf32, #tpu.memory_space<vmem>>, %arg2: memref<1x32xf32, #tpu.memory_space<vmem>>, %arg3: memref<1x32xf32, #tpu.memory_space<vmem>>, %arg4: memref<16x32xf32, #tpu.memory_space<vmem>>) attributes {dimension_semantics = [#tpu.dimension_semantics<parallel>], iteration_bounds = array<i64: 1>, scalar_prefetch = 0 : i64, scratch_operands = 0 : i64, tpu.core_type = #tpu.core_type<tc>, window_params = [{transform_indices = @transform_0, window_bounds = array<i64: 16, 32>}, {pipeline_mode = #tpu.pipeline_mode<synchronous>, transform_indices = @transform_1, window_bounds = array<i64: 1, 32>}, {pipeline_mode = #tpu.pipeline_mode<synchronous>, transform_indices = @transform_2, window_bounds = array<i64: 1, 32>}, {transform_indices = @transform_3, window_bounds = array<i64: 16, 32>}]} {
    %c0 = arith.constant 0 : index
    %c0_0 = arith.constant 0 : index
    %0 = vector.load %arg1[%c0, %c0_0] : memref<16x32xf32, #tpu.memory_space<vmem>>, vector<16x32xf32>
    %cst = arith.constant dense<0.000000e+00> : vector<16xf32>
    %1 = vector.multi_reduction <add>, %0, %cst [1] : vector<16x32xf32> to vector<16xf32>
    %2 = vector.shape_cast %1 : vector<16xf32> to vector<16x1xf32>
    %cst_1 = arith.constant 3.200000e+01 : f32
    %3 = vector.broadcast %cst_1 : f32 to vector<16x1xf32>
    %4 = arith.divf %2, %3 : vector<16x1xf32>
    %5 = vector.broadcast %4 : vector<16x1xf32> to vector<16x32xf32>
    %6 = arith.subf %0, %5 : vector<16x32xf32>
    %7 = arith.mulf %6, %6 : vector<16x32xf32>
    %cst_2 = arith.constant dense<0.000000e+00> : vector<16xf32>
    %8 = vector.multi_reduction <add>, %7, %cst_2 [1] : vector<16x32xf32> to vector<16xf32>
    %9 = vector.shape_cast %8 : vector<16xf32> to vector<16x1xf32>
    %cst_3 = arith.constant 3.200000e+01 : f32
    %10 = vector.broadcast %cst_3 : f32 to vector<16x1xf32>
    %11 = arith.divf %9, %10 : vector<16x1xf32>
    %cst_4 = arith.constant 9.99999996E-13 : f32
    %12 = vector.broadcast %cst_4 : f32 to vector<16x1xf32>
    %13 = arith.addf %11, %12 : vector<16x1xf32>
    %14 = math.rsqrt %13 : vector<16x1xf32>
    %15 = vector.broadcast %14 : vector<16x1xf32> to vector<16x32xf32>
    %16 = arith.mulf %6, %15 : vector<16x32xf32>
    %c0_5 = arith.constant 0 : index
    %c0_6 = arith.constant 0 : index
    %17 = vector.load %arg2[%c0_5, %c0_6] : memref<1x32xf32, #tpu.memory_space<vmem>>, vector<1x32xf32>
    %18 = vector.broadcast %17 : vector<1x32xf32> to vector<16x32xf32>
    %19 = arith.mulf %18, %16 : vector<16x32xf32>
    %c0_7 = arith.constant 0 : index
    %c0_8 = arith.constant 0 : index
    %20 = vector.load %arg3[%c0_7, %c0_8] : memref<1x32xf32, #tpu.memory_space<vmem>>, vector<1x32xf32>
    %21 = vector.broadcast %20 : vector<1x32xf32> to vector<16x32xf32>
    %22 = arith.addf %19, %21 : vector<16x32xf32>
    %c0_9 = arith.constant 0 : index
    %c0_10 = arith.constant 0 : index
    %23 = vector.load %arg4[%c0_9, %c0_10] : memref<16x32xf32, #tpu.memory_space<vmem>>, vector<16x32xf32>
    tpu.vector_store %arg4[%c0_9, %c0_10], %22 {strides = array<i32>} : memref<16x32xf32, #tpu.memory_space<vmem>>, vector<16x32xf32>,
    return
  }
  func.func @transform_0(%arg0: i32) -> (i32, i32) {
    %c0_i32 = arith.constant 0 : i32
    %c0_i32_0 = arith.constant 0 : i32
    return %arg0, %c0_i32 : i32, i32
  }
  func.func @transform_1(%arg0: i32) -> (i32, i32) {
    %c0_i32 = arith.constant 0 : i32
    %c0_i32_0 = arith.constant 0 : i32
    %c0_i32_1 = arith.constant 0 : i32
    return %c0_i32, %c0_i32_0 : i32, i32
  }
  func.func @transform_2(%arg0: i32) -> (i32, i32) {
    %c0_i32 = arith.constant 0 : i32
    %c0_i32_0 = arith.constant 0 : i32
    %c0_i32_1 = arith.constant 0 : i32
    return %c0_i32, %c0_i32_0 : i32, i32
  }
  func.func @transform_3(%arg0: i32) -> (i32, i32) {
    %c0_i32 = arith.constant 0 : i32
    %c0_i32_0 = arith.constant 0 : i32
    return %arg0, %c0_i32 : i32, i32
  }
}

</mosaic_0001>

<bundles_post_ra>
// kernel: tpu_custom_call.1
= control target key start
LH: loop header
LB: loop body
LE: loop exit
PB: predicated region body
PF: predicated region fallthrough
CT: control target
= control target key end

     0   :  { %8 = vsyncpa [#allocation3], 0  ;;  %s198_s0 = inlined_call_operand.hbm [shape: f32[16,32], index: 0, kind: input, shape index: {}]   ;;  %s199_s1 = inlined_call_operand.vmem [shape: f32[1,32], index: 1, kind: input, shape index: {}]   ;;  %s200_s2 = inlined_call_operand.vmem [shape: f32[1,32], index: 2, kind: input, shape index: {}]   ;;  %s201_s3 = inlined_call_operand.hbm [shape: f32[16,32], index: 3, kind: output, shape index: {}]  }
   0x1   :  { %9 = vsyncpa [#allocation4], 0  ;;  %s150_s12 = smov [#allocation2]  }
   0x2   :  { %s15_s13 = sshll.u32 %s150_s12, 4  ;;  %s16_s13 = int_to_ptr.vmem [resolvable:$true] %s15_s13 }
   0x3   :  { %s114_s14 = scalar_lea.vmem %s16_s13, 256  ;;  %p119_p1 = scmp.lt.s32.totalorder %s16_s13, %s16_s13 }
   0x4   :  { %p115_p0 = scmp.ne.s32.totalorder %s16_s13, %s114_s14  ;;  %p120_p2 = scmp.lt.s32.totalorder %s114_s14, %s114_s14 }
   0x6   :  { %p121_p3 = por %p120_p2, %p119_p1 }
   0x8   :  { %p122_p4 = pnand %p121_p3, %p115_p0 }
   0xa   :  { %125 = shalt.err (!%p122_p4)
}
   0xb   :  { %s151_s15 = smov 128   ;;  %s152_s16 = smov 8  }
   0xc   :  { %21 = dma.hbm_to_vmem [thread:$0]  %s198_s0, 256, %s16_s13, [#allocation3], %s151_s15, %s151_s15, %s152_s16  }
   0xd   :  { %146 = dma.done.wait [#allocation3], 256  }
   0xe   :  { %147 = vsyncadd [#allocation3], 4294967040  ;;  %vm31_vm0 = vcmask 261120   ;;  %v29_v0 = vld [vmem:[#allocation2] sm:$0xff]  ;;  %v30_v1 = vld [vmem:[#allocation2 + $0x8] sm:$0xff]  ;;  %s153_s22 = smov [#allocation5]  }
   0xf   :  { %v32_v2 = vsel %vm31_vm0, %v29_v0, 0.0  ;;  %v35_v3 = vsel %vm31_vm0, %v30_v1, 0.0  ;;  %v96_v21 = vld [vmem:[%s199_s1] ss:$0 sm:$0xff]  ;;  %s84_s23 = sshll.u32 %s153_s22, 4  ;;  %s85_s23 = int_to_ptr.vmem [resolvable:$true] %s84_s23 }
  0x10   :  { %33 = vadd.xlane.f32.xlu0 %v32_v2  ;;  %v97_v23 = vld [vmem:[%s200_s2] ss:$0 sm:$0xff]  ;;  %s126_s24 = scalar_lea.vmem %s85_s23, 256  ;;  %p131_p6 = scmp.lt.s32.totalorder %s85_s23, %s85_s23 }
  0x11   :  { %p127_p5 = scmp.ne.s32.totalorder %s85_s23, %s126_s24  ;;  %p132_p7 = scmp.lt.s32.totalorder %s126_s24, %s126_s24 }
  0x13   :  { %p133_p8 = por %p132_p7, %p131_p6 }
  0x14   :  { %36 = vadd.xlane.f32.xlu0 %v35_v3 }
  0x15   :  { %p134_p9 = pnand %p133_p8, %p127_p5 }
  0x99   :  { %v34_v4 = vpop.xlane.xlu0 %33 }
  0x9a   :  { %v39_v5 = vmul.f32 0.03125, %v34_v4 }
  0x9c   :  { %v41_v6 = vsub.f32 %v29_v0, %v39_v5 }
  0x9d   :  { %v37_v7 = vpop.xlane.xlu0 %36 }
  0x9e   :  { %v40_v8 = vmul.f32 0.03125, %v37_v7  ;;  %v43_v9 = vmul.f32 %v41_v6, %v41_v6 }
  0xa0   :  { %v42_v10 = vsub.f32 %v30_v1, %v40_v8  ;;  %v45_v11 = vsel %vm31_vm0, %v43_v9, 0.0 }
  0xa1   :  { %46 = vadd.xlane.f32.xlu1 %v45_v11 }
  0xa2   :  { %v44_v12 = vmul.f32 %v42_v10, %v42_v10 }
  0xa4   :  { %v48_v13 = vsel %vm31_vm0, %v44_v12, 0.0 }
  0xa5   :  { %49 = vadd.xlane.f32.xlu1 %v48_v13 }
 0x12a   :  { %v47_v14 = vpop.xlane.xlu1 %46 }
 0x12b   :  { %v51_v15 = vmul.f32 0.03125, %v47_v14 }
 0x12d   :  { %v53_v16 = vadd.f32 1e-12, %v51_v15 }
 0x12e   :  { %v50_v17 = vpop.xlane.xlu1 %49 }
 0x12f   :  { %102 = vrsqrt.f32 %v53_v16  ;;  %v52_v18 = vmul.f32 0.03125, %v50_v17 }
 0x131   :  { %v54_v19 = vadd.f32 1e-12, %v52_v18 }
 0x133   :  { %104 = vrsqrt.f32 %v54_v19 }
 0x13c   :  { %v103_v20 = vpop.eup %102 }
 0x13d   :  { %v57_v22 = vmul.f32 %v103_v20, %v41_v6 }
 0x13f   :  { %v66_v24 = vmul.f32 %v96_v21, %v57_v22 }
 0x140   :  { %v105_v25 = vpop.eup %104 }
 0x141   :  { %v58_v26 = vmul.f32 %v105_v25, %v42_v10  ;;  %v75_v27 = vadd.f32 %v97_v23, %v66_v24 }
 0x143   :  { %v67_v28 = vmul.f32 %v96_v21, %v58_v26  ;;  %77 = vst.msk [vmem:[#allocation5] sm:$0xff] %vm31_vm0, %v75_v27 }
 0x145   :  { %v76_v29 = vadd.f32 %v97_v23, %v67_v28 }
 0x147   :  { %78 = vst.msk [vmem:[#allocation5 + $0x8] sm:$0xff] %vm31_vm0, %v76_v29 }
 0x148   :  { %137 = shalt.err (!%p134_p9)
}
 0x149   :  { %90 = dma.vmem_to_hbm [thread:$0]  %s85_s23, 256, %s201_s3, [#allocation4], %s151_s15, %s151_s15, %s152_s16  }
 0x14a   :  { %148 = dma.done.wait [#allocation4], 256  }
 0x14b   :  { %149 = vsyncadd [#allocation4], 4294967040 }
 0x14c   :  { %94 = vsyncpa [#allocation3], 1 }
 0x14d   :  { %95 = vsyncpa [#allocation4], 1 }

</bundles_post_ra>
